<compile_context>
chip_gen: v7x
topology: tpu7x:2x2x1
jax: 0.10.0
libtpu: 0.0.40
codegen_flags: <defaults>
</compile_context>

<pallas_src>
import functools

import jax
import jax.numpy as jnp
from jax import lax
from jax.experimental import pallas as pl
from jax.experimental.pallas import tpu as pltpu


# --------------------------------------------------------------------------- #
# Kernel
# --------------------------------------------------------------------------- #
def _block_kernel(x_ref, w1t_ref, b1_ref, wdw_ref, mask_ref, b2_ref,
                  w3t_ref, b3_ref, *rest,
                  stride, shortcut_mode, W, roll_fwd, matmul_dtype):
    """Processes one batch tile (one grid step).

    Internal layout: channels on sublanes, flattened (B_t, H, W) on the lane
    axis.  shortcut_mode: 0 = none (stride != 1), 1 = identity, 2 = conv+bn.
    """
    if stride != 1:
        sel_ref, o_ref = rest
    elif shortcut_mode == 2:
        wsct_ref, bsc_ref, o_ref = rest
    else:
        (o_ref,) = rest

    L = x_ref.shape[1]                        # B_t * H * W lanes

    x = x_ref[...]                            # (Cin, L) f32
    x_mm = x.astype(matmul_dtype)

    # ---- stage 1: 1x1 expand conv (MXU); bn1 scale folded into w1t ----
    h1 = jnp.dot(w1t_ref[...], x_mm, preferred_element_type=jnp.float32)
    h1 = jnp.maximum(h1 + b1_ref[...], 0.0)   # (planes, L)

    # ---- stage 2: depthwise 3x3 via XLU rolls + precomputed edge masks ----
    wdw = wdw_ref[...]                        # (9, planes, 1) f32, bn2 folded in
    masks = mask_ref[...]                     # (9, L) f32, host-precomputed
    acc = h1 * wdw[4]                         # center tap needs no mask
    for kh in range(3):
        for kw in range(3):
            dh, dw = kh - 1, kw - 1
            if dh == 0 and dw == 0:
                continue
            s = dh * W + dw
            shift = (-s) % L if roll_fwd else s % L
            tap = pltpu.roll(h1, shift, axis=1)   # XLU rotation along lanes
            k = kh * 3 + kw
            acc = acc + tap * masks[k:k + 1] * wdw[k]

    if stride != 1:
        # One-shot subsample with a host-precomputed block-diagonal 0/1
        # selection matrix (MXU); keeps the output lane-dense (B_t*HoWo lanes).
        acc = jnp.dot(acc.astype(sel_ref.dtype), sel_ref[...],
                      preferred_element_type=jnp.float32)

    h2 = jnp.maximum(acc + b2_ref[...], 0.0)  # (planes, Lo)

    # ---- stage 3: 1x1 project conv (MXU); bn3 scale folded into w3t ----
    h3 = jnp.dot(w3t_ref[...], h2.astype(matmul_dtype),
                 preferred_element_type=jnp.float32)
    h3 = h3 + b3_ref[...]

    # ---- shortcut ----
    if shortcut_mode == 1:                    # identity
        h3 = h3 + x
    elif shortcut_mode == 2:                  # 1x1 conv + bn (scale folded)
        sc = jnp.dot(wsct_ref[...], x_mm, preferred_element_type=jnp.float32)
        h3 = h3 + sc + bsc_ref[...]

    o_ref[...] = h3.astype(o_ref.dtype)


# --------------------------------------------------------------------------- #
# Host-side helpers
# --------------------------------------------------------------------------- #
def _fold_bn(gamma, beta, mean, var, eps=1e-5):
    scale = gamma.astype(jnp.float32) / jnp.sqrt(var.astype(jnp.float32) + eps)
    bias = beta.astype(jnp.float32) - mean.astype(jnp.float32) * scale
    return scale, bias


def _edge_masks(bt, H, W):
    """(9, bt*H*W) f32: 3x3-pad-1 edge masks; also kill cross-image roll wrap."""
    HW = H * W
    hw = jnp.arange(bt * HW) % HW
    h = hw // W
    w = hw % W
    rows = []
    for kh in range(3):
        for kw in range(3):
            dh, dw = kh - 1, kw - 1
            rows.append((h + dh >= 0) & (h + dh < H) &
                        (w + dw >= 0) & (w + dw < W))
    return jnp.stack(rows).astype(jnp.float32)


def _subsample_matrix(bt, H, W, stride, dtype):
    """Block-diagonal 0/1 matrix (bt*H*W, bt*Ho*Wo) picking strided positions."""
    HW = H * W
    Ho = (H - 1) // stride + 1
    Wo = (W - 1) // stride + 1
    HoWo = Ho * Wo
    rows = jnp.arange(bt * HW)[:, None]
    cols = jnp.arange(bt * HoWo)[None, :]
    same_img = (rows // HW) == (cols // HoWo)
    hw_c = cols % HoWo
    src_hw = (hw_c // Wo) * (stride * W) + (hw_c % Wo) * stride
    return (same_img & ((rows % HW) == src_hw)).astype(dtype)


def _choose_batch_tile(N, HW, Cin, planes, Cout, *,
                       vmem_budget_bytes=16 << 20, min_grid=2):
    """Pick how many images to pack onto the lane axis per grid step."""
    def fits(bt):
        # dominant live f32 terms: x/out blocks (double-buffered) + h1/acc/taps
        return 4 * bt * HW * (2 * Cin + 2 * Cout + 4 * planes) <= vmem_budget_bytes

    divs = [d for d in range(1, N + 1) if N % d == 0 and fits(d)]
    if not divs:
        return 1
    # prefer the largest tile that still leaves >= min_grid steps (v7x: 2 TCs)
    pref = [d for d in divs if N // d >= min_grid]
    bt = pref[-1] if pref else divs[-1]
    # at tiny batches prefer amortizing the ~600-cycle per-step overhead over
    # megacore sharding if the lane axis would otherwise stay < 512 wide
    if bt * HW < 512 and divs[-1] > bt:
        bt = divs[-1]
    return bt


@functools.lru_cache(maxsize=None)
def _roll_matches_jnp():
    """Defensive one-time probe: resolve pltpu.roll's rotation direction."""
    x = jnp.arange(8 * 128, dtype=jnp.float32).reshape(8, 128)

    def _k(x_ref, o_ref):
        o_ref[...] = pltpu.roll(x_ref[...], 1, axis=1)

    y = pl.pallas_call(_k, out_shape=jax.ShapeDtypeStruct((8, 128), jnp.float32))(x)
    return bool(y[0, 0] == x[0, 127])    # True -> identical to jnp.roll semantics


# --------------------------------------------------------------------------- #
# Wrapper
# --------------------------------------------------------------------------- #
def block_forward(x_nchw, params, *, stride, matmul_dtype=jnp.float32,
                  batch_tile=None):
    """x_nchw: (N, Cin, H, W) float32. Returns (N, Cout, Ho, Wo) float32."""
    N, Cin, H, W = x_nchw.shape
    planes = params["w1"].shape[1]
    Cout = params["w3"].shape[1]
    HW = H * W
    Ho = (H - 1) // stride + 1
    Wo = (W - 1) // stride + 1
    HoWo = Ho * Wo

    if stride != 1:
        shortcut_mode = 0
    elif Cin == Cout:
        shortcut_mode = 1
    else:
        shortcut_mode = 2

    bt = batch_tile if batch_tile is not None else _choose_batch_tile(
        N, HW, Cin, planes, Cout)
    assert N % bt == 0, (N, bt)
    G = N // bt
    L = bt * HW
    Lo = bt * HoWo

    s1, b1 = _fold_bn(*params["bn1"])
    s2, b2 = _fold_bn(*params["bn2"])
    s3, b3 = _fold_bn(*params["bn3"])

    # BN scales folded into conv weights on the host (fold in f32, cast last).
    w1t = (params["w1"].T.astype(jnp.float32) * s1[:, None]).astype(matmul_dtype)
    w3t = (params["w3"].T.astype(jnp.float32) * s3[:, None]).astype(matmul_dtype)
    wdw = (params["wdw"].astype(jnp.float32) * s2[None, :]).reshape(9, planes, 1)

    masks = _edge_masks(bt, H, W)                           # (9, L) f32

    # Batch tile interleaved onto the lane axis: (G, Cin, bt*HW).
    # (Layout plumbing done by XLA outside the kernel; a no-op when bt == 1.)
    x_lane = jnp.transpose(
        x_nchw.astype(jnp.float32).reshape(G, bt, Cin, HW),
        (0, 2, 1, 3)).reshape(G, Cin, L)

    operands = [x_lane, w1t, b1.reshape(-1, 1), wdw, masks,
                b2.reshape(-1, 1), w3t, b3.reshape(-1, 1)]
    if stride != 1:
        operands.append(_subsample_matrix(bt, H, W, stride, matmul_dtype))
    if shortcut_mode == 2:      # only ship shortcut weights when actually used
        ssc, bsc = _fold_bn(*params["bnsc"])
        wsct = (params["wsc"].T.astype(jnp.float32)
                * ssc[:, None]).astype(matmul_dtype)
        operands += [wsct, bsc.reshape(-1, 1)]

    def _const_spec(a):
        nd = a.ndim
        return pl.BlockSpec(a.shape, lambda g, _nd=nd: (0,) * _nd)  # resident

    in_specs = ([pl.BlockSpec((None, Cin, L), lambda g: (g, 0, 0))]
                + [_const_spec(a) for a in operands[1:]])
    out_specs = pl.BlockSpec((None, Cout, Lo), lambda g: (g, 0, 0))

    # Explicit scoped-VMEM limit (re-derived for v7x 64 MiB / v5e 16 MiB default).
    io_bytes = 2 * 4 * (Cin * L + Cout * Lo)                # double-buffered I/O
    res_bytes = 2 * sum(int(a.size) * a.dtype.itemsize for a in operands[1:])
    live_bytes = 6 * 4 * planes * L                         # h1/acc/tap temps
    vmem_limit = int(min(max(2 * (io_bytes + res_bytes + live_bytes), 8 << 20),
                         48 << 20))

    kernel = functools.partial(
        _block_kernel, stride=stride, shortcut_mode=shortcut_mode, W=W,
        roll_fwd=_roll_matches_jnp(), matmul_dtype=matmul_dtype)

    out = pl.pallas_call(
        kernel,
        grid=(G,),
        in_specs=in_specs,
        out_specs=out_specs,
        out_shape=jax.ShapeDtypeStruct((G, Cout, Lo), jnp.float32),
        compiler_params=pltpu.CompilerParams(
            dimension_semantics=("parallel",),
            vmem_limit_bytes=vmem_limit),
    )(*operands)

    # Un-interleave the batch tile from the lane axis (no-op when bt == 1).
    out = jnp.transpose(out.reshape(G, Cout, bt, HoWo), (0, 2, 1, 3))
    return out.reshape(N, Cout, Ho, Wo)


# --------------------------------------------------------------------------- #
# Pure-JAX reference (correctness check)
# --------------------------------------------------------------------------- #
def _bn_ref(y, bn, eps=1e-5):
    gamma, beta, mean, var = bn
    return (y - mean) / jnp.sqrt(var + eps) * gamma + beta


def block_reference(x_nchw, params, *, stride):
    x = jnp.transpose(x_nchw, (0, 2, 3, 1))          # NHWC
    Cin = x.shape[-1]
    w1 = params["w1"]
    planes = w1.shape[1]
    w3 = params["w3"]
    Cout = w3.shape[1]

    dn = ("NHWC", "HWIO", "NHWC")
    h1 = lax.conv_general_dilated(x, w1.reshape(1, 1, Cin, planes),
                                  (1, 1), "VALID", dimension_numbers=dn)
    h1 = jax.nn.relu(_bn_ref(h1, params["bn1"]))

    wdw = params["wdw"].reshape(3, 3, 1, planes)
    h2 = lax.conv_general_dilated(h1, wdw, (stride, stride),
                                  ((1, 1), (1, 1)), dimension_numbers=dn,
                                  feature_group_count=planes)
    h2 = jax.nn.relu(_bn_ref(h2, params["bn2"]))

    h3 = lax.conv_general_dilated(h2, w3.reshape(1, 1, planes, Cout),
                                  (1, 1), "VALID", dimension_numbers=dn)
    h3 = _bn_ref(h3, params["bn3"])

    if stride == 1:
        if Cin == Cout:
            h3 = h3 + x
        else:
            sc = lax.conv_general_dilated(x, params["wsc"].reshape(1, 1, Cin, Cout),
                                          (1, 1), "VALID", dimension_numbers=dn)
            h3 = h3 + _bn_ref(sc, params["bnsc"])
    return jnp.transpose(h3, (0, 3, 1, 2))


def make_params(key, in_planes, out_planes, expansion):
    planes = expansion * in_planes
    ks = jax.random.split(key, 8)

    def bn(k, c):
        k1, k2, k3, k4 = jax.random.split(k, 4)
        gamma = jax.random.uniform(k1, (c,), jnp.float32, 0.5, 1.5)
        beta = jax.random.normal(k2, (c,), jnp.float32) * 0.1
        mean = jax.random.normal(k3, (c,), jnp.float32) * 0.1
        var = jax.random.uniform(k4, (c,), jnp.float32, 0.5, 1.5)
        return (gamma, beta, mean, var)

    return {
        "w1": jax.random.normal(ks[0], (in_planes, planes), jnp.float32) * 0.2,
        "bn1": bn(ks[1], planes),
        "wdw": jax.random.normal(ks[2], (9, planes), jnp.float32) * 0.2,
        "bn2": bn(ks[3], planes),
        "w3": jax.random.normal(ks[4], (planes, out_planes), jnp.float32) * 0.2,
        "bn3": bn(ks[5], out_planes),
        "wsc": jax.random.normal(ks[6], (in_planes, out_planes), jnp.float32) * 0.2,
        "bnsc": bn(ks[7], out_planes),
    }


if __name__ == "__main__":
    root = jax.random.PRNGKey(0)

    cases = [
        # (name, N, Cin, H, W, expansion, Cout, stride, matmul_dtype, tol)
        ("stride1_identity_shortcut",  2, 8, 16, 16, 2, 8, 1, jnp.float32, 1e-3),
        ("stride1_conv_shortcut",      2, 4, 16, 16, 2, 8, 1, jnp.float32, 1e-3),
        ("stride2_no_shortcut",        2, 4, 16, 16, 2, 8, 2, jnp.float32, 1e-3),
        ("stride1_conv_shortcut_bf16", 2, 4, 16, 16, 2, 8, 1, jnp.bfloat16, 5e-2),
        ("stride2_batch4_tiled",       4, 4, 16, 16, 2, 8, 2, jnp.float32, 1e-3),
    ]

    for i, (name, N, Cin, H, W, expansion, Cout, stride, mdt, tol) in enumerate(cases):
        kx, kp = jax.random.split(jax.random.fold_in(root, i))
        x = jax.random.normal(kx, (N, Cin, H, W), jnp.float32)
        params = make_params(kp, Cin, Cout, expansion)

        out = jax.block_until_ready(
            block_forward(x, params, stride=stride, matmul_dtype=mdt))
        ref = jax.block_until_ready(block_reference(x, params, stride=stride))

        Ho = (H - 1) // stride + 1
        Wo = (W - 1) // stride + 1
        assert out.shape == (N, Cout, Ho, Wo), (name, out.shape)
        max_err = float(jnp.max(jnp.abs(out - ref)))
        assert jnp.allclose(out, ref, atol=tol, rtol=tol), (name, max_err)

    print("KERNEL_OK")
</pallas_src>

<mosaic_0001>
module attributes {stable_mosaic.version = 11 : i64} {
  func.func @_k(%arg0: memref<8x128xf32, #tpu.memory_space<vmem>>, %arg1: memref<8x128xf32, #tpu.memory_space<vmem>>) attributes {dimension_semantics = [], scalar_prefetch = 0 : i64, scratch_operands = 0 : i64, tpu.core_type = #tpu.core_type<tc>} {
    %c0 = arith.constant 0 : index
    %c0_0 = arith.constant 0 : index
    %0 = vector.load %arg0[%c0, %c0_0] : memref<8x128xf32, #tpu.memory_space<vmem>>, vector<8x128xf32>
    %c1_i32 = arith.constant 1 : i32
    %1 = tpu.dynamic_rotate %0 by %c1_i32 dim 1 : vector<8x128xf32>, i32 -> vector<8x128xf32>
    %c0_1 = arith.constant 0 : index
    %c0_2 = arith.constant 0 : index
    %2 = vector.load %arg1[%c0_1, %c0_2] : memref<8x128xf32, #tpu.memory_space<vmem>>, vector<8x128xf32>
    tpu.vector_store %arg1[%c0_1, %c0_2], %1 {strides = array<i32>} : memref<8x128xf32, #tpu.memory_space<vmem>>, vector<8x128xf32>,
    return
  }
}

</mosaic_0001>

<bundles_post_ra>
// kernel: tpu_custom_call.1
= control target key start
LH: loop header
LB: loop body
LE: loop exit
PB: predicated region body
PF: predicated region fallthrough
CT: control target
= control target key end

     0   :  { %6 = vsyncpa [#allocation3], 0  ;;  %s128_s0 = inlined_call_operand.hbm [shape: f32[8,128], index: 0, kind: input, shape index: {}]   ;;  %s129_s1 = inlined_call_operand.hbm [shape: f32[8,128], index: 1, kind: output, shape index: {}]  }
   0x1   :  { %7 = vsyncpa [#allocation4], 0  ;;  %s91_s6 = smov [#allocation2]   ;;  %s43_s10 = scalar_lea.hbm %s128_s0, 128 }
   0x2   :  { %s14_s7 = sshll.u32 %s91_s6, 4  ;;  %p44_p0 = scmp.ne.s32.totalorder %s128_s0, %s43_s10  ;;  %s15_s7 = int_to_ptr.vmem [resolvable:$true] %s14_s7 }
   0x3   :  { %p47_p1 = scmp.lt.u32.totalorder %s43_s10, %s128_s0 }
   0x5   :  { %p49_p2 = pnand %p47_p1, %p44_p0 }
   0x7   :  { %52 = shalt.err (!%p49_p2)
}
   0x8   :  { %s53_s15 = scalar_lea.vmem %s15_s7, 128  ;;  %p58_p4 = scmp.lt.s32.totalorder %s15_s7, %s15_s7 }
   0x9   :  { %p54_p3 = scmp.ne.s32.totalorder %s15_s7, %s53_s15  ;;  %p59_p5 = scmp.lt.s32.totalorder %s53_s15, %s53_s15 }
   0xb   :  { %p60_p6 = por %p59_p5, %p58_p4 }
   0xd   :  { %p61_p7 = pnand %p60_p6, %p54_p3 }
   0xf   :  { %64 = shalt.err (!%p61_p7)
}
  0x10   :  { %17 = dma.hbm_to_vmem [thread:$0]  %s128_s0, 128, %s15_s7, [#allocation3]  }
  0x11   :  { %87 = dma.done.wait [#allocation3], 128  }
  0x12   :  { %88 = vsyncadd [#allocation3], 4294967168  ;;  %v21_v0 = vld [vmem:[#allocation2] sm:$0xff]  ;;  %s92_s18 = smov 1   ;;  %s93_s19 = smov [#allocation5]  }
  0x13   :  { %22 = vrot.lane.b32.xlu0 %v21_v0, %s92_s18  ;;  %s31_s20 = sshll.u32 %s93_s19, 4  ;;  %s32_s20 = int_to_ptr.vmem [resolvable:$true] %s31_s20 }
  0x14   :  { %s65_s21 = scalar_lea.vmem %s32_s20, 128  ;;  %p70_p9 = scmp.lt.s32.totalorder %s32_s20, %s32_s20 }
  0x15   :  { %p66_p8 = scmp.ne.s32.totalorder %s32_s20, %s65_s21  ;;  %p71_p10 = scmp.lt.s32.totalorder %s65_s21, %s65_s21 }
  0x17   :  { %p72_p11 = por %p71_p10, %p70_p9 }
  0x19   :  { %p73_p12 = pnand %p72_p11, %p66_p8 }
  0x85   :  { %v23_v1 = vpop.permute.xlu0 %22 }
  0x86   :  { %24 = vst [vmem:[#allocation5] sm:$0xff] %v23_v1 }
  0x87   :  { %76 = shalt.err (!%p73_p12)
}
  0x88   :  { %s77_s0 = scalar_lea.hbm %s129_s1, 128 }
  0x89   :  { %p78_p13 = scmp.ne.s32.totalorder %s129_s1, %s77_s0  ;;  %p81_p0 = scmp.lt.u32.totalorder %s77_s0, %s129_s1 }
  0x8b   :  { %p83_p1 = pnand %p81_p0, %p78_p13 }
  0x8d   :  { %86 = shalt.err (!%p83_p1)
}
  0x8e   :  { %34 = dma.vmem_to_hbm [thread:$0]  %s32_s20, 128, %s129_s1, [#allocation4]  }
  0x8f   :  { %89 = dma.done.wait [#allocation4], 128  }
  0x90   :  { %90 = vsyncadd [#allocation4], 4294967168 }
  0x91   :  { %38 = vsyncpa [#allocation3], 1 }
  0x92   :  { %39 = vsyncpa [#allocation4], 1 }

</bundles_post_ra>
